<compile_context>
chip_gen: v5e
topology: v5e:2x2
jax: 0.10.0
libtpu: 0.0.40
codegen_flags: <defaults>
</compile_context>

<pallas_src>
import functools

import jax
import jax.numpy as jnp
from jax import lax
from jax.experimental import pallas as pl
from jax.experimental.pallas import tpu as pltpu


def _vmem_capacity_bytes():
    """Physical VMEM per TensorCore; conservative 64 MiB (v7x) fallback."""
    try:
        info = pltpu.get_tpu_info()
        cap = int(getattr(info, "vmem_capacity_bytes", 0))
        if cap > 0:
            return cap
    except Exception:
        pass
    return 64 << 20


def _choose_seq_chunk(S):
    """Largest chunk in {64,32,16,8} that divides S (keeps per-chunk f32
    temporaries small); falls back to S itself for short / odd sequences."""
    for cs in (64, 32, 16, 8):
        if cs < S and S % cs == 0:
            return cs
    return S


def _choose_batch_tile(B, S, H, Lp, itemsize, cs, vmem_bytes):
    """Largest batch tile whose pipeline working set fits ~3/4 of VMEM."""
    usable = (vmem_bytes * 3) // 4                    # headroom for compiler scratch
    fixed = 2 * (H * Lp + Lp) * 4                     # resident head weight + bias
    per_row = (2 * S * H * itemsize                   # double-buffered top_vec block
               + 2 * S * 4                            # double-buffered mask block (f32)
               + 2 * cs * H * 4                       # in-kernel chunk temporaries (f32)
               + H * 4                                # f32 accumulator
               + 2 * Lp * 4)                          # double-buffered output block
    tb = max(1, (usable - fixed) // per_row)
    if tb >= B:
        return B                                      # whole batch: full-extent block dims
    tb = int(max(8, (tb // 8) * 8))                   # keep the (8,128) sublane rule
    for cand in range(tb, 7, -8):                     # prefer a tile that divides B
        if B % cand == 0:
            return cand
    return tb                                         # partial edge block handled by Pallas


def _pool_head_kernel(mask_ref, top_ref, w_ref, b_ref, out_ref, *, cs):
    # mask_ref: [TB, S] f32 | top_ref: [TB, S, H] f32/bf16
    # w_ref:    [H, Lp] f32 | b_ref: [1, Lp] f32 | out_ref: [TB, Lp] f32
    tb, seq = mask_ref.shape
    hidden = top_ref.shape[-1]
    n_chunks = seq // cs

    mask = mask_ref[...]                                          # [TB, S]

    if n_chunks == 1:
        # Short sequences: single-shot masked sum.
        pooled = jnp.sum(
            top_ref[...].astype(jnp.float32) * mask[:, :, None], axis=1
        )                                                         # [TB, H]
    else:
        # Long sequences: chunk over S so only [TB, cs, H] f32 temporaries
        # exist at any time (leaves VMEM for bigger batch tiles).
        def body(c, acc):
            s0 = pl.multiple_of(c * cs, cs)
            top_c = top_ref[:, pl.ds(s0, cs), :].astype(jnp.float32)
            m_c = mask_ref[:, pl.ds(s0, cs)]
            return acc + jnp.sum(top_c * m_c[:, :, None], axis=1)

        pooled = lax.fori_loop(0, n_chunks, body,
                               jnp.zeros((tb, hidden), jnp.float32))

    # One reciprocal per batch row (exact 1.0/x), then scale.
    denom = jnp.sum(mask, axis=-1, keepdims=True)                 # [TB, 1]
    pooled = pooled * (1.0 / denom)

    # Fused linear head on the MXU; bias broadcasts over the batch rows.
    out_ref[...] = (
        jnp.dot(pooled, w_ref[...], preferred_element_type=jnp.float32)
        + b_ref[...]
    ).astype(out_ref.dtype)


def rumour_classifier_head(top_vec, mask_src, w, b):
    """Masked mean pooling + linear head (post-BERT part of forward()).

    top_vec:  [B, S, H] float32 or bfloat16 encoder hidden states
    mask_src: [B, S]    attention mask (1 = real token, 0 = padding)
    w:        [H, L]    linear head weight (transposed vs torch [L, H])
    b:        [L]       linear head bias
    returns:  logits with torch-style .squeeze() applied
    """
    B, S, H = top_vec.shape
    L = w.shape[1]
    mask_src = mask_src.astype(jnp.float32)

    # Pad the (tiny) head params up to 128 output lanes -> lane-dense stores.
    Lp = ((L + 127) // 128) * 128
    w_p = w.astype(jnp.float32)
    b_p = b.astype(jnp.float32).reshape(1, L)
    if Lp != L:
        w_p = jnp.pad(w_p, ((0, 0), (0, Lp - L)))
        b_p = jnp.pad(b_p, ((0, 0), (0, Lp - L)))

    vmem_bytes = _vmem_capacity_bytes()
    cs = _choose_seq_chunk(S)
    tb = _choose_batch_tile(B, S, H, Lp, jnp.dtype(top_vec.dtype).itemsize,
                            cs, vmem_bytes)
    n_steps = pl.cdiv(B, tb)

    # Never copy the big [B,S,H] tensor: only pad the tiny mask when the last
    # batch block is partial (ones keep the padded rows' denominator nonzero;
    # their outputs are masked off by Pallas anyway).
    if n_steps * tb != B:
        mask_src = jnp.pad(mask_src, ((0, n_steps * tb - B), (0, 0)),
                           constant_values=1.0)

    logits = pl.pallas_call(
        functools.partial(_pool_head_kernel, cs=cs),
        out_shape=jax.ShapeDtypeStruct((B, Lp), jnp.float32),
        grid=(n_steps,),
        in_specs=[
            pl.BlockSpec((tb, S), lambda i: (i, 0)),           # mask
            pl.BlockSpec((tb, S, H), lambda i: (i, 0, 0)),     # top_vec
            pl.BlockSpec((H, Lp), lambda i: (0, 0)),           # head weight (resident)
            pl.BlockSpec((1, Lp), lambda i: (0, 0)),           # head bias  (resident)
        ],
        out_specs=pl.BlockSpec((tb, Lp), lambda i: (i, 0)),
        compiler_params=pltpu.CompilerParams(
            dimension_semantics=("parallel",),
            vmem_limit_bytes=(vmem_bytes * 7) // 8,
        ),
    )(mask_src, top_vec, w_p, b_p)

    # torch's .squeeze(): drop all size-1 dims (no-op for B>1, L>1).
    return jnp.squeeze(logits[:, :L])


def _reference(top_vec, mask_src, w, b):
    masked = top_vec.astype(jnp.float32) * mask_src[:, :, None]
    pooled = masked.sum(axis=1) / mask_src.sum(axis=-1, keepdims=True)
    return jnp.squeeze(pooled @ w + b)


if __name__ == "__main__":
    # Small synthetic shapes consistent with the forward pass:
    #   batch=2, seq=8, hidden=32, num_labels=4
    B, S, H, L = 2, 8, 32, 4

    key = jax.random.PRNGKey(0)
    k_top, k_w, k_b = jax.random.split(key, 3)

    # Synthetic BERT output hidden states.
    top_vec = jax.random.normal(k_top, (B, S, H), dtype=jnp.float32)

    # Attention mask: first sequence fully valid, second has 5 valid tokens.
    mask_src = jnp.array(
        [[1.0] * S,
         [1.0] * 5 + [0.0] * (S - 5)],
        dtype=jnp.float32,
    )

    # Deterministic linear-head params (torch nn.Linear-style uniform init).
    bound = 1.0 / jnp.sqrt(jnp.float32(H))
    w = jax.random.uniform(k_w, (H, L), jnp.float32, -bound, bound)
    b = jax.random.uniform(k_b, (L,), jnp.float32, -bound, bound)

    preds = rumour_classifier_head(top_vec, mask_src, w, b)
    preds = jax.block_until_ready(preds)

    ref = _reference(top_vec, mask_src, w, b)
    assert preds.shape == ref.shape
    assert jnp.allclose(preds, ref, atol=1e-5, rtol=1e-5)

    print("KERNEL_OK")
</pallas_src>

<mosaic_0001>
module attributes {stable_mosaic.version = 11 : i64} {
  func.func @_pool_head_kernel(%arg0: i32, %arg1: memref<2x8xf32, #tpu.memory_space<vmem>>, %arg2: memref<2x8x32xf32, #tpu.memory_space<vmem>>, %arg3: memref<32x128xf32, #tpu.memory_space<vmem>>, %arg4: memref<1x128xf32, #tpu.memory_space<vmem>>, %arg5: memref<2x128xf32, #tpu.memory_space<vmem>>) attributes {dimension_semantics = [#tpu.dimension_semantics<parallel>], iteration_bounds = array<i64: 1>, scalar_prefetch = 0 : i64, scratch_operands = 0 : i64, tpu.core_type = #tpu.core_type<tc>, window_params = [{transform_indices = @transform_0, window_bounds = array<i64: 2, 8>}, {transform_indices = @transform_1, window_bounds = array<i64: 2, 8, 32>}, {pipeline_mode = #tpu.pipeline_mode<synchronous>, transform_indices = @transform_2, window_bounds = array<i64: 32, 128>}, {pipeline_mode = #tpu.pipeline_mode<synchronous>, transform_indices = @transform_3, window_bounds = array<i64: 1, 128>}, {transform_indices = @transform_4, window_bounds = array<i64: 2, 128>}]} {
    %c0 = arith.constant 0 : index
    %c0_0 = arith.constant 0 : index
    %0 = vector.load %arg1[%c0, %c0_0] : memref<2x8xf32, #tpu.memory_space<vmem>>, vector<2x8xf32>
    %c0_1 = arith.constant 0 : index
    %c0_2 = arith.constant 0 : index
    %c0_3 = arith.constant 0 : index
    %1 = vector.load %arg2[%c0_1, %c0_2, %c0_3] : memref<2x8x32xf32, #tpu.memory_space<vmem>>, vector<2x8x32xf32>
    %2 = vector.shape_cast %0 : vector<2x8xf32> to vector<2x8x1xf32>
    %3 = vector.broadcast %2 : vector<2x8x1xf32> to vector<2x8x32xf32>
    %4 = arith.mulf %1, %3 : vector<2x8x32xf32>
    %cst = arith.constant dense<0.000000e+00> : vector<2x32xf32>
    %5 = vector.multi_reduction <add>, %4, %cst [1] : vector<2x8x32xf32> to vector<2x32xf32>
    %cst_4 = arith.constant dense<0.000000e+00> : vector<2xf32>
    %6 = vector.multi_reduction <add>, %0, %cst_4 [1] : vector<2x8xf32> to vector<2xf32>
    %7 = vector.shape_cast %6 : vector<2xf32> to vector<2x1xf32>
    %cst_5 = arith.constant 1.000000e+00 : f32
    %8 = vector.broadcast %cst_5 : f32 to vector<2x1xf32>
    %9 = arith.divf %8, %7 : vector<2x1xf32>
    %10 = vector.broadcast %9 : vector<2x1xf32> to vector<2x32xf32>
    %11 = arith.mulf %5, %10 : vector<2x32xf32>
    %c0_6 = arith.constant 0 : index
    %c0_7 = arith.constant 0 : index
    %12 = vector.load %arg3[%c0_6, %c0_7] : memref<32x128xf32, #tpu.memory_space<vmem>>, vector<32x128xf32>
    %cst_8 = arith.constant dense<0.000000e+00> : vector<2x128xf32>
    %13 = tpu.matmul %11, %12, %cst_8 {dimension_numbers = #tpu.dot_dimension_numbers<[1], [0], [0], [1], [0, 0, 1, 1], [], []>} : vector<2x32xf32>, vector<32x128xf32>, vector<2x128xf32> -> vector<2x128xf32>
    %c0_9 = arith.constant 0 : index
    %c0_10 = arith.constant 0 : index
    %14 = vector.load %arg4[%c0_9, %c0_10] : memref<1x128xf32, #tpu.memory_space<vmem>>, vector<1x128xf32>
    %15 = vector.broadcast %14 : vector<1x128xf32> to vector<2x128xf32>
    %16 = arith.addf %13, %15 : vector<2x128xf32>
    %c0_11 = arith.constant 0 : index
    %c0_12 = arith.constant 0 : index
    %17 = vector.load %arg5[%c0_11, %c0_12] : memref<2x128xf32, #tpu.memory_space<vmem>>, vector<2x128xf32>
    tpu.vector_store %arg5[%c0_11, %c0_12], %16 {strides = array<i32>} : memref<2x128xf32, #tpu.memory_space<vmem>>, vector<2x128xf32>,
    return
  }
  func.func @transform_0(%arg0: i32) -> (i32, i32) {
    %c0_i32 = arith.constant 0 : i32
    %c0_i32_0 = arith.constant 0 : i32
    return %arg0, %c0_i32 : i32, i32
  }
  func.func @transform_1(%arg0: i32) -> (i32, i32, i32) {
    %c0_i32 = arith.constant 0 : i32
    %c0_i32_0 = arith.constant 0 : i32
    %c0_i32_1 = arith.constant 0 : i32
    return %arg0, %c0_i32, %c0_i32_0 : i32, i32, i32
  }
  func.func @transform_2(%arg0: i32) -> (i32, i32) {
    %c0_i32 = arith.constant 0 : i32
    %c0_i32_0 = arith.constant 0 : i32
    %c0_i32_1 = arith.constant 0 : i32
    return %c0_i32, %c0_i32_0 : i32, i32
  }
  func.func @transform_3(%arg0: i32) -> (i32, i32) {
    %c0_i32 = arith.constant 0 : i32
    %c0_i32_0 = arith.constant 0 : i32
    %c0_i32_1 = arith.constant 0 : i32
    return %c0_i32, %c0_i32_0 : i32, i32
  }
  func.func @transform_4(%arg0: i32) -> (i32, i32) {
    %c0_i32 = arith.constant 0 : i32
    %c0_i32_0 = arith.constant 0 : i32
    return %arg0, %c0_i32 : i32, i32
  }
}

</mosaic_0001>

<bundles_post_ra>
// kernel: tpu_custom_call.1
= control target key start
LH: loop header
LB: loop body
LE: loop exit
PB: predicated region body
PF: predicated region fallthrough
CT: control target
= control target key end

     0   :  { %9 = vsyncpa [#allocation3], 0  ;;  %s339_s0 = inlined_call_operand.hbm [shape: f32[2,8], index: 0, kind: input, shape index: {}]   ;;  %s340_s1 = inlined_call_operand.hbm [shape: f32[2,8,32], index: 1, kind: input, shape index: {}]   ;;  %s341_s2 = inlined_call_operand.hbm [shape: f32[32,128], index: 2, kind: input, shape index: {}]   ;;  %s342_s3 = inlined_call_operand.vmem [shape: f32[1,128], index: 3, kind: input, shape index: {}]   ;;  %s343_s4 = inlined_call_operand.hbm [shape: f32[2,128], index: 4, kind: output, shape index: {}]  }
   0x1   :  { %10 = vsyncpa [#allocation6], 0  ;;  %s27_s17 = sshll.u32 %s340_s1, 4  ;;  %s28_s17 = int_to_ptr.hbm [resolvable:$true] %s27_s17 }
   0x2   :  { %11 = vsyncpa [#allocation4], 0  ;;  %s290_s18 = smov [#allocation5]   ;;  %s17_s22 = sshll.u32 %s339_s0, 4  ;;  %s18_s22 = int_to_ptr.hbm [resolvable:$true] %s17_s22 }
   0x3   :  { %s29_s19 = sshll.u32 %s290_s18, 4  ;;  %s291_s23 = smov 128   ;;  %s30_s19 = int_to_ptr.vmem [resolvable:$true] %s29_s19 }
   0x4   :  { %s292_s24 = smov 8   ;;  %s293_s25 = smov [#allocation2]  }
   0x5   :  { %35 = dma.hbm_to_vmem [thread:$0]  %s28_s17, 256, %s30_s19, [#allocation6], %s291_s23, %s291_s23, %s292_s24  }
   0x6   :  { %s19_s26 = sshll.u32 %s293_s25, 4  ;;  %s40_s29 = sshll.u32 %s341_s2, 4  ;;  %s20_s26 = int_to_ptr.vmem [resolvable:$true] %s19_s26  ;;  %s41_s29 = int_to_ptr.hbm [resolvable:$true] %s40_s29 }
   0x7   :  { %22 = dma.hbm_to_vmem [thread:$0]  %s18_s22, 32, %s20_s26, [#allocation3]  }
   0x8   :  { %s294_s1 = smov [#allocation7]  }
   0x9   :  { %s42_s30 = sshll.u32 %s294_s1, 4  ;;  %s43_s30 = int_to_ptr.vmem [resolvable:$true] %s42_s30 }
   0xa   :  { %48 = dma.hbm_to_vmem [thread:$0]  %s41_s29, 512, %s43_s30, [#allocation6], %s291_s23, %s291_s23, %s292_s24  }
   0xb   :  { %284 = dma.done.wait [#allocation3], 32  }
   0xc   :  { %285 = vsyncadd [#allocation3], 4294967264 }
   0xd   :  { %286 = dma.done.wait [#allocation6], 768  }
   0xe   :  { %287 = vsyncadd [#allocation6], 4294966528  ;;  %v67_v0 = vlaneseq  ;;  %vm97_vm0 = vcmask 58368   ;;  %v63_v2 = vld [vmem:[#allocation2] sm:$0x3]  ;;  %v125_v6 = vld [vmem:[#allocation7 + $0x18] sm:$0xff] }
   0xf   :  { %v98_v3 = vsel %vm97_vm0, %v63_v2, 0.0  ;;  %v66_v4 = vperm.slane %v63_v2, 0  ;;  %v73_v5 = vperm.slane %v63_v2, 1  ;;  %v124_v7 = vld [vmem:[#allocation7 + $0x10] sm:$0xff]  ;;  %149 = vmatpush.msra.mxu0 %v125_v6  ;;  %v123_v8 = vld [vmem:[#allocation7 + $0x8] sm:$0xff]  ;;  %v122_v9 = vld [vmem:[#allocation7] sm:$0xff] }
  0x10   :  { %v68_v1 = vshrl.u32 %v67_v0, 7  ;;  %99 = vadd.xlane.f32.xlu0 %v98_v3  ;;  %v64_v11 = vld [vmem:[#allocation5] sm:$0xff]  ;;  %vm82_vm1 = vcmask 261120   ;;  %v65_v19 = vld [vmem:[#allocation5 + $0x8] sm:$0xff]  ;;  %vm133_vm6 = vcmask 1041409   ;;  %s295_s5 = smov [#allocation8]  }
  0x11   :  { %150 = vmatpush.msra.mxu0 %v124_v7  ;;  %v185_v46 = vld [vmem:[%s342_s3] ss:$0 sm:$0xff]  ;;  %s163_s6 = sshll.u32 %s295_s5, 4  ;;  %s165_s9 = sshll.u32 %s343_s4, 4  ;;  %s164_s6 = int_to_ptr.vmem [resolvable:$true] %s163_s6  ;;  %s166_s9 = int_to_ptr.hbm [resolvable:$true] %s165_s9 }
  0x12   :  { %184 = vset.pattern.permute.xlu1 %v68_v1  ;;  %183 = vset.pattern.permute.xlu0 %v68_v1 }
  0x13   :  { %151 = vmatpush.msra.mxu0 %v123_v8 }
  0x15   :  { %152 = vmatpush.msra.mxu0 %v122_v9 }
  0x1a   :  { %71 = vperm.xlu1 %184, %v66_v4  }
  0x24   :  { %78 = vperm.xlu0 %183, %v73_v5  }
  0x83   :  { %v100_v10 = vpop.xlane.xlu0 %99 }
  0x84   :  { %186 = vrcp.f32 %v100_v10  ;;  %v112_v28 = vand.u32 2147483648, %v100_v10  ;;  %vm106_vm3 = vweird.f32 %v100_v10  ;;  %v110_v29 = vand.u32 2147483647, %v100_v10 }
  0x86   :  { %v113_v34 = vor.u32 1.1754944e-38, %v112_v28  ;;  %vm111_vm5 = vcmp.eq.f32.partialorder %v110_v29, 8.507059e+37 }
  0x8a   :  { %v187_v14 = vpop.eup %186 }
  0x8b   :  { %v102_v16 = vmul.f32 %v187_v14, %v100_v10  ;;  %vm107_vm2 = vweird.f32 %v187_v14 }
  0x8c   :  { %v72_v12 = vpop.permute.xlu1 %71  ;;  %vm108_vm4 = vmor %vm106_vm3, %vm107_vm2 }
  0x8d   :  { %v80_v13 = vmul.f32 %v72_v12, %v64_v11  ;;  %v103_v18 = vsub.f32 1.0, %v102_v16 }
  0x8f   :  { %v83_v15 = vsel %vm82_vm1, %v80_v13, 0.0  ;;  %v104_v21 = vmul.f32 %v187_v14, %v103_v18 }
  0x90   :  { %v84_v17 = vrot.slane %v83_v15, 4 }
  0x91   :  { %v105_v26 = vadd.f32 %v187_v14, %v104_v21 }
  0x92   :  { %v85_v20 = vadd.f32 %v84_v17, %v83_v15 }
  0x93   :  { %v109_v33 = vsel %vm108_vm4, %v187_v14, %v105_v26 }
  0x94   :  { %v86_v24 = vrot.slane %v85_v20, 2  ;;  %v114_v37 = vsel %vm111_vm5, %v113_v34, %v109_v33 }
  0x95   :  { %v117_v41 = vrot.slane %v114_v37, 1 }
  0x96   :  { %v79_v22 = vpop.permute.xlu0 %78  ;;  %v87_v30 = vadd.f32 %v86_v24, %v85_v20 }
  0x97   :  { %v81_v23 = vmul.f32 %v79_v22, %v65_v19 }
  0x98   :  { %v88_v35 = vrot.slane %v87_v30, 1 }
  0x99   :  { %v90_v25 = vsel %vm82_vm1, %v81_v23, 0.0 }
  0x9a   :  { %v91_v27 = vrot.slane %v90_v25, 4  ;;  %v89_v39 = vadd.f32 %v88_v35, %v87_v30 }
  0x9c   :  { %v92_v31 = vadd.f32 %v91_v27, %v90_v25  ;;  %v120_v43 = vmul.f32 %v114_v37, %v89_v39 }
  0x9e   :  { %v93_v32 = vrot.slane %v92_v31, 2 }
  0xa0   :  { %v94_v36 = vadd.f32 %v93_v32, %v92_v31 }
  0xa2   :  { %v95_v38 = vrot.slane %v94_v36, 1 }
  0xa4   :  { %v96_v40 = vadd.f32 %v95_v38, %v94_v36 }
  0xa6   :  { %v121_v42 = vmul.f32 %v117_v41, %v96_v40 }
  0xa8   :  { %v132_v44 = vrot.slane %v121_v42, 7 }
  0xaa   :  { %v134_v45 = vsel %vm133_vm6, %v132_v44, %v120_v43 }
  0xab   :  { %176 = vmatmul.msk.f32.vlgmr.msra.gmra.mxu0 %vm82_vm1, %v134_v45 }
 0x128   :  { %v154_v47 = vpop.f32.mrf.mxu0 }
 0x129   :  { %v155_v48 = vadd.f32 %v185_v46, %v154_v47 }
 0x12b   :  { %157 = vst [vmem:[#allocation8] sm:$0x3] %v155_v48 }
 0x12c   :  { %168 = dma.vmem_to_hbm [thread:$0]  %s164_s6, 32, %s166_s9, [#allocation4]  }
 0x12d   :  { %288 = dma.done.wait [#allocation4], 32  }
 0x12e   :  { %289 = vsyncadd [#allocation4], 4294967264 }
 0x12f   :  { %173 = vsyncpa [#allocation3], 1 }
 0x130   :  { %174 = vsyncpa [#allocation6], 1 }
 0x131   :  { %175 = vsyncpa [#allocation4], 1 }

</bundles_post_ra>
